<compile_context>
chip_gen: v6e
topology: v6e:2x2x1
jax: 0.10.0
libtpu: 0.0.40
codegen_flags: <defaults>
</compile_context>

<pallas_src>
import functools

import jax
import jax.numpy as jnp
from jax import lax
from jax.experimental import pallas as pl
from jax.experimental.pallas import tpu as pltpu

LN_EPS = 1e-5
LANE = 128
SUBLANE = 8


def _round_up(x, m):
    return (x + m - 1) // m * m


# ----------------------------------------------------------------------------
# Kernel
# ----------------------------------------------------------------------------
def _critic_kernel(
    # streamed activations
    state_ref, action_ref,
    # resident trunk params
    wt_ref, bt_ref, gamma_ref, beta_ref,
    # resident fused head-1 params (both heads stacked along N)
    w1h_ref, w1a_ref, b1_ref,
    # resident per-head layer-2 params
    q1_w2_ref, q1_b2_ref, q2_w2_ref, q2_b2_ref,
    # resident fused lane-dense final projection (col0 = q1, col1 = q2)
    w3a_ref, w3b_ref, b3_ref,
    # output
    out_ref,
    *, feature_dim, hidden_pad,
):
    def mm(x, w_ref):
        w = w_ref[...]
        return jnp.dot(x.astype(w.dtype), w, preferred_element_type=jnp.float32)

    state = state_ref[...]
    action = action_ref[...]

    # ---- trunk: Linear -> LayerNorm -> Tanh (feature axis padded to 128) ----
    h = mm(state, wt_ref) + bt_ref[...]
    # padded feature columns of h are exactly zero (zero weight cols / bias);
    # use the true feature_dim for the statistics and mask the padded lanes.
    inv_f = 1.0 / float(feature_dim)
    mean = jnp.sum(h, axis=-1, keepdims=True) * inv_f
    col = lax.broadcasted_iota(jnp.int32, h.shape, 1)
    centered = jnp.where(col < feature_dim, h - mean, 0.0)
    var = jnp.sum(centered * centered, axis=-1, keepdims=True) * inv_f
    hn = centered * lax.rsqrt(var + LN_EPS)
    # padded gamma/beta are zero -> padded columns become tanh(0) = 0
    h = jnp.tanh(hn * gamma_ref[...] + beta_ref[...])

    # ---- fused first layer of BOTH heads: (TILE_B, 2*Hp) ----
    x12 = mm(h, w1h_ref) + mm(action, w1a_ref) + b1_ref[...]
    x12 = jnp.maximum(x12, 0.0)
    x1 = x12[:, :hidden_pad]        # lane-tile aligned static slices
    x2 = x12[:, hidden_pad:]

    # ---- per-head second layer ----
    x1 = jnp.maximum(mm(x1, q1_w2_ref) + q1_b2_ref[...], 0.0)
    x2 = jnp.maximum(mm(x2, q2_w2_ref) + q2_b2_ref[...], 0.0)

    # ---- fused, lane-dense final projection: (TILE_B, 128) ----
    y = mm(x1, w3a_ref) + mm(x2, w3b_ref) + b3_ref[...]
    out_ref[...] = y.astype(out_ref.dtype)


# ----------------------------------------------------------------------------
# Wrapper-side weight packing (done once) + forward
# ----------------------------------------------------------------------------
def prepare_packed_params(p, repr_dim, action_dim, feature_dim, hidden_dim,
                          compute_dtype=jnp.float32):
    """Zero-pads to lane multiples and fuses the two heads' first/last layers."""
    Kp = _round_up(repr_dim, LANE)
    Ap = _round_up(action_dim, LANE)
    Fp = _round_up(feature_dim, LANE)
    Hp = _round_up(hidden_dim, LANE)

    def pad2(w, r, c):
        return jnp.pad(w, ((0, r - w.shape[0]), (0, c - w.shape[1])))

    wd = compute_dtype
    packed = {}
    # trunk
    packed["wt"] = pad2(p["wt"], Kp, Fp).astype(wd)
    packed["bt"] = pad2(p["bt"], 1, Fp).astype(jnp.float32)
    packed["gamma"] = pad2(p["gamma"], 1, Fp).astype(jnp.float32)
    packed["beta"] = pad2(p["beta"], 1, Fp).astype(jnp.float32)

    # head-1 first linear: split concat-input weight into h-part / action-part,
    # pad, and stack the two heads along the output (lane) axis.
    def split_w1(w1):
        wh = pad2(w1[:feature_dim], Fp, Hp)
        wa = pad2(w1[feature_dim:], Ap, Hp)
        return wh, wa

    q1_wh, q1_wa = split_w1(p["q1_w1"])
    q2_wh, q2_wa = split_w1(p["q2_w1"])
    packed["w1h"] = jnp.concatenate([q1_wh, q2_wh], axis=1).astype(wd)
    packed["w1a"] = jnp.concatenate([q1_wa, q2_wa], axis=1).astype(wd)
    packed["b1"] = jnp.concatenate(
        [pad2(p["q1_b1"], 1, Hp), pad2(p["q2_b1"], 1, Hp)], axis=1
    ).astype(jnp.float32)

    # per-head second linear
    packed["q1_w2"] = pad2(p["q1_w2"], Hp, Hp).astype(wd)
    packed["q1_b2"] = pad2(p["q1_b2"], 1, Hp).astype(jnp.float32)
    packed["q2_w2"] = pad2(p["q2_w2"], Hp, Hp).astype(wd)
    packed["q2_b2"] = pad2(p["q2_b2"], 1, Hp).astype(jnp.float32)

    # fused lane-dense final projection (128 output lanes, only 0/1 used)
    w3a = jnp.zeros((Hp, LANE), jnp.float32).at[:hidden_dim, 0:1].set(p["q1_w3"])
    w3b = jnp.zeros((Hp, LANE), jnp.float32).at[:hidden_dim, 1:2].set(p["q2_w3"])
    b3 = (jnp.zeros((1, LANE), jnp.float32)
          .at[0, 0].set(p["q1_b3"][0, 0])
          .at[0, 1].set(p["q2_b3"][0, 0]))
    packed["w3a"] = w3a.astype(wd)
    packed["w3b"] = w3b.astype(wd)
    packed["b3"] = b3
    return packed


def critic_forward(state, action, packed, *, feature_dim, tile_b=128,
                   compute_dtype=jnp.float32):
    """Fused Critic forward. Returns (q1, q2), each (B, 1) float32."""
    B, repr_dim = state.shape
    action_dim = action.shape[1]
    Kp, _ = packed["wt"].shape
    Ap = packed["w1a"].shape[0]
    Hp = packed["q1_w2"].shape[0]

    tile_b = min(tile_b, _round_up(B, SUBLANE))
    Bp = _round_up(B, tile_b)

    # Pad/cast the streamed activations (zero rows/cols are sliced off below).
    state_p = jnp.pad(state, ((0, Bp - B), (0, Kp - repr_dim))).astype(compute_dtype)
    action_p = jnp.pad(action, ((0, Bp - B), (0, Ap - action_dim))).astype(compute_dtype)

    weight_order = ["wt", "bt", "gamma", "beta", "w1h", "w1a", "b1",
                    "q1_w2", "q1_b2", "q2_w2", "q2_b2", "w3a", "w3b", "b3"]
    weights = [packed[k] for k in weight_order]

    def stream_spec(shape):
        return pl.BlockSpec(shape, lambda i: (i, 0))

    def resident_spec(arr):
        return pl.BlockSpec(arr.shape, lambda i: (0, 0))

    kernel = functools.partial(_critic_kernel,
                               feature_dim=feature_dim, hidden_pad=Hp)

    out = pl.pallas_call(
        kernel,
        out_shape=jax.ShapeDtypeStruct((Bp, LANE), jnp.float32),
        grid=(Bp // tile_b,),
        in_specs=[stream_spec((tile_b, Kp)), stream_spec((tile_b, Ap))]
                 + [resident_spec(w) for w in weights],
        out_specs=stream_spec((tile_b, LANE)),
        compiler_params=pltpu.CompilerParams(
            dimension_semantics=("parallel",),
            vmem_limit_bytes=48 * 1024 * 1024,
        ),
    )(state_p, action_p, *weights)

    return out[:B, 0:1], out[:B, 1:2]


# ----------------------------------------------------------------------------
# Reference + synthetic init
# ----------------------------------------------------------------------------
def init_params(key, repr_dim, action_dim, feature_dim, hidden_dim):
    """Deterministic synthetic init (stand-in for utils.weight_init)."""
    ks = jax.random.split(key, 14)

    def dense(k, fan_in, fan_out):
        s = 1.0 / jnp.sqrt(fan_in)
        return jax.random.uniform(k, (fan_in, fan_out), jnp.float32, -s, s)

    def bias(k, fan_in, n):
        s = 1.0 / jnp.sqrt(fan_in)
        return jax.random.uniform(k, (1, n), jnp.float32, -s, s)

    p = {}
    p["wt"] = dense(ks[0], repr_dim, feature_dim)
    p["bt"] = bias(ks[1], repr_dim, feature_dim)
    p["gamma"] = jnp.ones((1, feature_dim), jnp.float32)
    p["beta"] = jnp.zeros((1, feature_dim), jnp.float32)
    fa = feature_dim + action_dim
    for i, q in enumerate(["q1", "q2"]):
        o = 2 + 6 * i
        p[f"{q}_w1"] = dense(ks[o + 0], fa, hidden_dim)
        p[f"{q}_b1"] = bias(ks[o + 1], fa, hidden_dim)
        p[f"{q}_w2"] = dense(ks[o + 2], hidden_dim, hidden_dim)
        p[f"{q}_b2"] = bias(ks[o + 3], hidden_dim, hidden_dim)
        p[f"{q}_w3"] = dense(ks[o + 4], hidden_dim, 1)
        p[f"{q}_b3"] = bias(ks[o + 5], hidden_dim, 1)
    return p


def critic_reference(state, action, p):
    """Pure-JAX reference matching the PyTorch forward semantics."""
    h = state @ p["wt"] + p["bt"]
    mean = jnp.mean(h, -1, keepdims=True)
    var = jnp.mean((h - mean) ** 2, -1, keepdims=True)
    h = (h - mean) / jnp.sqrt(var + LN_EPS)
    h = jnp.tanh(h * p["gamma"] + p["beta"])
    ha = jnp.concatenate([h, action], axis=-1)

    def head(q):
        x = jnp.maximum(ha @ p[f"{q}_w1"] + p[f"{q}_b1"], 0.0)
        x = jnp.maximum(x @ p[f"{q}_w2"] + p[f"{q}_b2"], 0.0)
        return x @ p[f"{q}_w3"] + p[f"{q}_b3"]

    return head("q1"), head("q2")


# ----------------------------------------------------------------------------
# Demo / self-test
# ----------------------------------------------------------------------------
if __name__ == "__main__":
    B, REPR_DIM, ACTION_DIM, FEATURE_DIM, HIDDEN_DIM = 8, 32, 4, 16, 32

    key = jax.random.PRNGKey(0)
    k_state, k_action, k_params = jax.random.split(key, 3)

    state = jax.random.normal(k_state, (B, REPR_DIM), jnp.float32)
    action = jax.random.normal(k_action, (B, ACTION_DIM), jnp.float32)
    params = init_params(k_params, REPR_DIM, ACTION_DIM, FEATURE_DIM, HIDDEN_DIM)

    q1_ref, q2_ref = critic_reference(state, action, params)

    # -- float32 path (exact, tight tolerance) --
    packed_f32 = prepare_packed_params(
        params, REPR_DIM, ACTION_DIM, FEATURE_DIM, HIDDEN_DIM, jnp.float32)
    q1, q2 = critic_forward(state, action, packed_f32, feature_dim=FEATURE_DIM)
    q1 = jax.block_until_ready(q1)
    q2 = jax.block_until_ready(q2)
    assert q1.shape == (B, 1) and q2.shape == (B, 1)
    assert jnp.allclose(q1, q1_ref, atol=1e-4, rtol=1e-4)
    assert jnp.allclose(q2, q2_ref, atol=1e-4, rtol=1e-4)

    # -- bf16-MXU path (v6e/v5e perf mode; f32 accumulate + f32 epilogue) --
    packed_bf16 = prepare_packed_params(
        params, REPR_DIM, ACTION_DIM, FEATURE_DIM, HIDDEN_DIM, jnp.bfloat16)
    q1b, q2b = critic_forward(state, action, packed_bf16,
                              feature_dim=FEATURE_DIM,
                              compute_dtype=jnp.bfloat16)
    q1b = jax.block_until_ready(q1b)
    q2b = jax.block_until_ready(q2b)
    assert jnp.allclose(q1b, q1_ref, atol=1.5e-1, rtol=1.5e-1)
    assert jnp.allclose(q2b, q2_ref, atol=1.5e-1, rtol=1.5e-1)

    print("KERNEL_OK")
</pallas_src>

<mosaic_0001>
module attributes {stable_mosaic.version = 11 : i64} {
  func.func @_critic_kernel(%arg0: i32, %arg1: memref<8x128xf32, #tpu.memory_space<vmem>>, %arg2: memref<8x128xf32, #tpu.memory_space<vmem>>, %arg3: memref<128x128xf32, #tpu.memory_space<vmem>>, %arg4: memref<1x128xf32, #tpu.memory_space<vmem>>, %arg5: memref<1x128xf32, #tpu.memory_space<vmem>>, %arg6: memref<1x128xf32, #tpu.memory_space<vmem>>, %arg7: memref<128x256xf32, #tpu.memory_space<vmem>>, %arg8: memref<128x256xf32, #tpu.memory_space<vmem>>, %arg9: memref<1x256xf32, #tpu.memory_space<vmem>>, %arg10: memref<128x128xf32, #tpu.memory_space<vmem>>, %arg11: memref<1x128xf32, #tpu.memory_space<vmem>>, %arg12: memref<128x128xf32, #tpu.memory_space<vmem>>, %arg13: memref<1x128xf32, #tpu.memory_space<vmem>>, %arg14: memref<128x128xf32, #tpu.memory_space<vmem>>, %arg15: memref<128x128xf32, #tpu.memory_space<vmem>>, %arg16: memref<1x128xf32, #tpu.memory_space<vmem>>, %arg17: memref<8x128xf32, #tpu.memory_space<vmem>>) attributes {dimension_semantics = [#tpu.dimension_semantics<parallel>], iteration_bounds = array<i64: 1>, scalar_prefetch = 0 : i64, scratch_operands = 0 : i64, tpu.core_type = #tpu.core_type<tc>, window_params = [{transform_indices = @transform_0, window_bounds = array<i64: 8, 128>}, {transform_indices = @transform_1, window_bounds = array<i64: 8, 128>}, {pipeline_mode = #tpu.pipeline_mode<synchronous>, transform_indices = @transform_2, window_bounds = array<i64: 128, 128>}, {pipeline_mode = #tpu.pipeline_mode<synchronous>, transform_indices = @transform_3, window_bounds = array<i64: 1, 128>}, {pipeline_mode = #tpu.pipeline_mode<synchronous>, transform_indices = @transform_4, window_bounds = array<i64: 1, 128>}, {pipeline_mode = #tpu.pipeline_mode<synchronous>, transform_indices = @transform_5, window_bounds = array<i64: 1, 128>}, {pipeline_mode = #tpu.pipeline_mode<synchronous>, transform_indices = @transform_6, window_bounds = array<i64: 128, 256>}, {pipeline_mode = #tpu.pipeline_mode<synchronous>, transform_indices = @transform_7, window_bounds = array<i64: 128, 256>}, {pipeline_mode = #tpu.pipeline_mode<synchronous>, transform_indices = @transform_8, window_bounds = array<i64: 1, 256>}, {pipeline_mode = #tpu.pipeline_mode<synchronous>, transform_indices = @transform_9, window_bounds = array<i64: 128, 128>}, {pipeline_mode = #tpu.pipeline_mode<synchronous>, transform_indices = @transform_10, window_bounds = array<i64: 1, 128>}, {pipeline_mode = #tpu.pipeline_mode<synchronous>, transform_indices = @transform_11, window_bounds = array<i64: 128, 128>}, {pipeline_mode = #tpu.pipeline_mode<synchronous>, transform_indices = @transform_12, window_bounds = array<i64: 1, 128>}, {pipeline_mode = #tpu.pipeline_mode<synchronous>, transform_indices = @transform_13, window_bounds = array<i64: 128, 128>}, {pipeline_mode = #tpu.pipeline_mode<synchronous>, transform_indices = @transform_14, window_bounds = array<i64: 128, 128>}, {pipeline_mode = #tpu.pipeline_mode<synchronous>, transform_indices = @transform_15, window_bounds = array<i64: 1, 128>}, {transform_indices = @transform_16, window_bounds = array<i64: 8, 128>}]} {
    %c0 = arith.constant 0 : index
    %c0_0 = arith.constant 0 : index
    %0 = vector.load %arg1[%c0, %c0_0] : memref<8x128xf32, #tpu.memory_space<vmem>>, vector<8x128xf32>
    %c0_1 = arith.constant 0 : index
    %c0_2 = arith.constant 0 : index
    %1 = vector.load %arg2[%c0_1, %c0_2] : memref<8x128xf32, #tpu.memory_space<vmem>>, vector<8x128xf32>
    %c0_3 = arith.constant 0 : index
    %c0_4 = arith.constant 0 : index
    %2 = vector.load %arg3[%c0_3, %c0_4] : memref<128x128xf32, #tpu.memory_space<vmem>>, vector<128x128xf32>
    %cst = arith.constant dense<0.000000e+00> : vector<8x128xf32>
    %3 = tpu.matmul %0, %2, %cst {dimension_numbers = #tpu.dot_dimension_numbers<[1], [0], [0], [1], [0, 0, 1, 1], [], []>} : vector<8x128xf32>, vector<128x128xf32>, vector<8x128xf32> -> vector<8x128xf32>
    %c0_5 = arith.constant 0 : index
    %c0_6 = arith.constant 0 : index
    %4 = vector.load %arg4[%c0_5, %c0_6] : memref<1x128xf32, #tpu.memory_space<vmem>>, vector<1x128xf32>
    %5 = vector.broadcast %4 : vector<1x128xf32> to vector<8x128xf32>
    %6 = arith.addf %3, %5 : vector<8x128xf32>
    %cst_7 = arith.constant dense<0.000000e+00> : vector<8xf32>
    %7 = vector.multi_reduction <add>, %6, %cst_7 [1] : vector<8x128xf32> to vector<8xf32>
    %8 = vector.shape_cast %7 : vector<8xf32> to vector<8x1xf32>
    %cst_8 = arith.constant 6.250000e-02 : f32
    %9 = vector.broadcast %cst_8 : f32 to vector<8x1xf32>
    %10 = arith.mulf %8, %9 : vector<8x1xf32>
    %11 = tpu.iota {dimensions = array<i32: 1>} : vector<8x128xi32>
    %c16_i32 = arith.constant 16 : i32
    %12 = vector.broadcast %c16_i32 : i32 to vector<8x128xi32>
    %13 = arith.cmpi slt, %11, %12 : vector<8x128xi32>
    %14 = vector.broadcast %10 : vector<8x1xf32> to vector<8x128xf32>
    %15 = arith.subf %6, %14 : vector<8x128xf32>
    %cst_9 = arith.constant 0.000000e+00 : f32
    %16 = vector.broadcast %cst_9 : f32 to vector<8x128xf32>
    %17 = arith.select %13, %15, %16 : vector<8x128xi1>, vector<8x128xf32>
    %18 = arith.mulf %17, %17 : vector<8x128xf32>
    %cst_10 = arith.constant dense<0.000000e+00> : vector<8xf32>
    %19 = vector.multi_reduction <add>, %18, %cst_10 [1] : vector<8x128xf32> to vector<8xf32>
    %20 = vector.shape_cast %19 : vector<8xf32> to vector<8x1xf32>
    %cst_11 = arith.constant 6.250000e-02 : f32
    %21 = vector.broadcast %cst_11 : f32 to vector<8x1xf32>
    %22 = arith.mulf %20, %21 : vector<8x1xf32>
    %cst_12 = arith.constant 9.99999974E-6 : f32
    %23 = vector.broadcast %cst_12 : f32 to vector<8x1xf32>
    %24 = arith.addf %22, %23 : vector<8x1xf32>
    %25 = math.rsqrt %24 : vector<8x1xf32>
    %26 = vector.broadcast %25 : vector<8x1xf32> to vector<8x128xf32>
    %27 = arith.mulf %17, %26 : vector<8x128xf32>
    %c0_13 = arith.constant 0 : index
    %c0_14 = arith.constant 0 : index
    %28 = vector.load %arg5[%c0_13, %c0_14] : memref<1x128xf32, #tpu.memory_space<vmem>>, vector<1x128xf32>
    %29 = vector.broadcast %28 : vector<1x128xf32> to vector<8x128xf32>
    %30 = arith.mulf %27, %29 : vector<8x128xf32>
    %c0_15 = arith.constant 0 : index
    %c0_16 = arith.constant 0 : index
    %31 = vector.load %arg6[%c0_15, %c0_16] : memref<1x128xf32, #tpu.memory_space<vmem>>, vector<1x128xf32>
    %32 = vector.broadcast %31 : vector<1x128xf32> to vector<8x128xf32>
    %33 = arith.addf %30, %32 : vector<8x128xf32>
    %34 = math.tanh %33 : vector<8x128xf32>
    %c0_17 = arith.constant 0 : index
    %c0_18 = arith.constant 0 : index
    %35 = vector.load %arg7[%c0_17, %c0_18] : memref<128x256xf32, #tpu.memory_space<vmem>>, vector<128x256xf32>
    %cst_19 = arith.constant dense<0.000000e+00> : vector<8x256xf32>
    %36 = tpu.matmul %34, %35, %cst_19 {dimension_numbers = #tpu.dot_dimension_numbers<[1], [0], [0], [1], [0, 0, 1, 1], [], []>} : vector<8x128xf32>, vector<128x256xf32>, vector<8x256xf32> -> vector<8x256xf32>
    %c0_20 = arith.constant 0 : index
    %c0_21 = arith.constant 0 : index
    %37 = vector.load %arg8[%c0_20, %c0_21] : memref<128x256xf32, #tpu.memory_space<vmem>>, vector<128x256xf32>
    %cst_22 = arith.constant dense<0.000000e+00> : vector<8x256xf32>
    %38 = tpu.matmul %1, %37, %cst_22 {dimension_numbers = #tpu.dot_dimension_numbers<[1], [0], [0], [1], [0, 0, 1, 1], [], []>} : vector<8x128xf32>, vector<128x256xf32>, vector<8x256xf32> -> vector<8x256xf32>
    %39 = arith.addf %36, %38 : vector<8x256xf32>
    %c0_23 = arith.constant 0 : index
    %c0_24 = arith.constant 0 : index
    %40 = vector.load %arg9[%c0_23, %c0_24] : memref<1x256xf32, #tpu.memory_space<vmem>>, vector<1x256xf32>
    %41 = vector.broadcast %40 : vector<1x256xf32> to vector<8x256xf32>
    %42 = arith.addf %39, %41 : vector<8x256xf32>
    %cst_25 = arith.constant 0.000000e+00 : f32
    %43 = vector.broadcast %cst_25 : f32 to vector<8x256xf32>
    %44 = arith.maximumf %42, %43 : vector<8x256xf32>
    %45 = vector.extract_strided_slice %44 {offsets = [0, 0], sizes = [8, 128], strides = [1, 1]} : vector<8x256xf32> to vector<8x128xf32>
    %46 = vector.extract_strided_slice %44 {offsets = [0, 128], sizes = [8, 128], strides = [1, 1]} : vector<8x256xf32> to vector<8x128xf32>
    %c0_26 = arith.constant 0 : index
    %c0_27 = arith.constant 0 : index
    %47 = vector.load %arg10[%c0_26, %c0_27] : memref<128x128xf32, #tpu.memory_space<vmem>>, vector<128x128xf32>
    %cst_28 = arith.constant dense<0.000000e+00> : vector<8x128xf32>
    %48 = tpu.matmul %45, %47, %cst_28 {dimension_numbers = #tpu.dot_dimension_numbers<[1], [0], [0], [1], [0, 0, 1, 1], [], []>} : vector<8x128xf32>, vector<128x128xf32>, vector<8x128xf32> -> vector<8x128xf32>
    %c0_29 = arith.constant 0 : index
    %c0_30 = arith.constant 0 : index
    %49 = vector.load %arg11[%c0_29, %c0_30] : memref<1x128xf32, #tpu.memory_space<vmem>>, vector<1x128xf32>
    %50 = vector.broadcast %49 : vector<1x128xf32> to vector<8x128xf32>
    %51 = arith.addf %48, %50 : vector<8x128xf32>
    %cst_31 = arith.constant 0.000000e+00 : f32
    %52 = vector.broadcast %cst_31 : f32 to vector<8x128xf32>
    %53 = arith.maximumf %51, %52 : vector<8x128xf32>
    %c0_32 = arith.constant 0 : index
    %c0_33 = arith.constant 0 : index
    %54 = vector.load %arg12[%c0_32, %c0_33] : memref<128x128xf32, #tpu.memory_space<vmem>>, vector<128x128xf32>
    %cst_34 = arith.constant dense<0.000000e+00> : vector<8x128xf32>
    %55 = tpu.matmul %46, %54, %cst_34 {dimension_numbers = #tpu.dot_dimension_numbers<[1], [0], [0], [1], [0, 0, 1, 1], [], []>} : vector<8x128xf32>, vector<128x128xf32>, vector<8x128xf32> -> vector<8x128xf32>
    %c0_35 = arith.constant 0 : index
    %c0_36 = arith.constant 0 : index
    %56 = vector.load %arg13[%c0_35, %c0_36] : memref<1x128xf32, #tpu.memory_space<vmem>>, vector<1x128xf32>
    %57 = vector.broadcast %56 : vector<1x128xf32> to vector<8x128xf32>
    %58 = arith.addf %55, %57 : vector<8x128xf32>
    %cst_37 = arith.constant 0.000000e+00 : f32
    %59 = vector.broadcast %cst_37 : f32 to vector<8x128xf32>
    %60 = arith.maximumf %58, %59 : vector<8x128xf32>
    %c0_38 = arith.constant 0 : index
    %c0_39 = arith.constant 0 : index
    %61 = vector.load %arg14[%c0_38, %c0_39] : memref<128x128xf32, #tpu.memory_space<vmem>>, vector<128x128xf32>
    %cst_40 = arith.constant dense<0.000000e+00> : vector<8x128xf32>
    %62 = tpu.matmul %53, %61, %cst_40 {dimension_numbers = #tpu.dot_dimension_numbers<[1], [0], [0], [1], [0, 0, 1, 1], [], []>} : vector<8x128xf32>, vector<128x128xf32>, vector<8x128xf32> -> vector<8x128xf32>
    %c0_41 = arith.constant 0 : index
    %c0_42 = arith.constant 0 : index
    %63 = vector.load %arg15[%c0_41, %c0_42] : memref<128x128xf32, #tpu.memory_space<vmem>>, vector<128x128xf32>
    %cst_43 = arith.constant dense<0.000000e+00> : vector<8x128xf32>
    %64 = tpu.matmul %60, %63, %cst_43 {dimension_numbers = #tpu.dot_dimension_numbers<[1], [0], [0], [1], [0, 0, 1, 1], [], []>} : vector<8x128xf32>, vector<128x128xf32>, vector<8x128xf32> -> vector<8x128xf32>
    %65 = arith.addf %62, %64 : vector<8x128xf32>
    %c0_44 = arith.constant 0 : index
    %c0_45 = arith.constant 0 : index
    %66 = vector.load %arg16[%c0_44, %c0_45] : memref<1x128xf32, #tpu.memory_space<vmem>>, vector<1x128xf32>
    %67 = vector.broadcast %66 : vector<1x128xf32> to vector<8x128xf32>
    %68 = arith.addf %65, %67 : vector<8x128xf32>
    %c0_46 = arith.constant 0 : index
    %c0_47 = arith.constant 0 : index
    %69 = vector.load %arg17[%c0_46, %c0_47] : memref<8x128xf32, #tpu.memory_space<vmem>>, vector<8x128xf32>
    tpu.vector_store %arg17[%c0_46, %c0_47], %68 {strides = array<i32>} : memref<8x128xf32, #tpu.memory_space<vmem>>, vector<8x128xf32>,
    return
  }
  func.func @transform_0(%arg0: i32) -> (i32, i32) {
    %c0_i32 = arith.constant 0 : i32
    %c0_i32_0 = arith.constant 0 : i32
    return %arg0, %c0_i32 : i32, i32
  }
  func.func @transform_1(%arg0: i32) -> (i32, i32) {
    %c0_i32 = arith.constant 0 : i32
    %c0_i32_0 = arith.constant 0 : i32
    return %arg0, %c0_i32 : i32, i32
  }
  func.func @transform_2(%arg0: i32) -> (i32, i32) {
    %c0_i32 = arith.constant 0 : i32
    %c0_i32_0 = arith.constant 0 : i32
    %c0_i32_1 = arith.constant 0 : i32
    return %c0_i32, %c0_i32_0 : i32, i32
  }
  func.func @transform_3(%arg0: i32) -> (i32, i32) {
    %c0_i32 = arith.constant 0 : i32
    %c0_i32_0 = arith.constant 0 : i32
    %c0_i32_1 = arith.constant 0 : i32
    return %c0_i32, %c0_i32_0 : i32, i32
  }
  func.func @transform_4(%arg0: i32) -> (i32, i32) {
    %c0_i32 = arith.constant 0 : i32
    %c0_i32_0 = arith.constant 0 : i32
    %c0_i32_1 = arith.constant 0 : i32
    return %c0_i32, %c0_i32_0 : i32, i32
  }
  func.func @transform_5(%arg0: i32) -> (i32, i32) {
    %c0_i32 = arith.constant 0 : i32
    %c0_i32_0 = arith.constant 0 : i32
    %c0_i32_1 = arith.constant 0 : i32
    return %c0_i32, %c0_i32_0 : i32, i32
  }
  func.func @transform_6(%arg0: i32) -> (i32, i32) {
    %c0_i32 = arith.constant 0 : i32
    %c0_i32_0 = arith.constant 0 : i32
    %c0_i32_1 = arith.constant 0 : i32
    return %c0_i32, %c0_i32_0 : i32, i32
  }
  func.func @transform_7(%arg0: i32) -> (i32, i32) {
    %c0_i32 = arith.constant 0 : i32
    %c0_i32_0 = arith.constant 0 : i32
    %c0_i32_1 = arith.constant 0 : i32
    return %c0_i32, %c0_i32_0 : i32, i32
  }
  func.func @transform_8(%arg0: i32) -> (i32, i32) {
    %c0_i32 = arith.constant 0 : i32
    %c0_i32_0 = arith.constant 0 : i32
    %c0_i32_1 = arith.constant 0 : i32
    return %c0_i32, %c0_i32_0 : i32, i32
  }
  func.func @transform_9(%arg0: i32) -> (i32, i32) {
    %c0_i32 = arith.constant 0 : i32
    %c0_i32_0 = arith.constant 0 : i32
    %c0_i32_1 = arith.constant 0 : i32
    return %c0_i32, %c0_i32_0 : i32, i32
  }
  func.func @transform_10(%arg0: i32) -> (i32, i32) {
    %c0_i32 = arith.constant 0 : i32
    %c0_i32_0 = arith.constant 0 : i32
    %c0_i32_1 = arith.constant 0 : i32
    return %c0_i32, %c0_i32_0 : i32, i32
  }
  func.func @transform_11(%arg0: i32) -> (i32, i32) {
    %c0_i32 = arith.constant 0 : i32
    %c0_i32_0 = arith.constant 0 : i32
    %c0_i32_1 = arith.constant 0 : i32
    return %c0_i32, %c0_i32_0 : i32, i32
  }
  func.func @transform_12(%arg0: i32) -> (i32, i32) {
    %c0_i32 = arith.constant 0 : i32
    %c0_i32_0 = arith.constant 0 : i32
    %c0_i32_1 = arith.constant 0 : i32
    return %c0_i32, %c0_i32_0 : i32, i32
  }
  func.func @transform_13(%arg0: i32) -> (i32, i32) {
    %c0_i32 = arith.constant 0 : i32
    %c0_i32_0 = arith.constant 0 : i32
    %c0_i32_1 = arith.constant 0 : i32
    return %c0_i32, %c0_i32_0 : i32, i32
  }
  func.func @transform_14(%arg0: i32) -> (i32, i32) {
    %c0_i32 = arith.constant 0 : i32
    %c0_i32_0 = arith.constant 0 : i32
    %c0_i32_1 = arith.constant 0 : i32
    return %c0_i32, %c0_i32_0 : i32, i32
  }
  func.func @transform_15(%arg0: i32) -> (i32, i32) {
    %c0_i32 = arith.constant 0 : i32
    %c0_i32_0 = arith.constant 0 : i32
    %c0_i32_1 = arith.constant 0 : i32
    return %c0_i32, %c0_i32_0 : i32, i32
  }
  func.func @transform_16(%arg0: i32) -> (i32, i32) {
    %c0_i32 = arith.constant 0 : i32
    %c0_i32_0 = arith.constant 0 : i32
    return %arg0, %c0_i32 : i32, i32
  }
}

</mosaic_0001>

<bundles_post_ra>
// kernel: tpu_custom_call.1
= control target key start
LH: loop header
LB: loop body
LE: loop exit
PB: predicated region body
PF: predicated region fallthrough
CT: control target
= control target key end

     0   :  { %s1679_s0 = inlined_call_operand.hbm [shape: f32[8,128], index: 0, kind: input, shape index: {}]   ;;  %s1680_s1 = inlined_call_operand.hbm [shape: f32[8,128], index: 1, kind: input, shape index: {}]   ;;  %s1681_s2 = inlined_call_operand.hbm [shape: f32[128,128], index: 2, kind: input, shape index: {}]   ;;  %s1682_s3 = inlined_call_operand.vmem [shape: f32[1,128], index: 3, kind: input, shape index: {}]   ;;  %s1683_s4 = inlined_call_operand.vmem [shape: f32[1,128], index: 4, kind: input, shape index: {}]   ;;  %s1684_s5 = inlined_call_operand.vmem [shape: f32[1,128], index: 5, kind: input, shape index: {}]   ;;  %s1685_s6 = inlined_call_operand.hbm [shape: f32[128,256], index: 6, kind: input, shape index: {}]   ;;  %s1686_s7 = inlined_call_operand.hbm [shape: f32[128,256], index: 7, kind: input, shape index: {}]   ;;  %s1687_s8 = inlined_call_operand.vmem [shape: f32[1,256], index: 8, kind: input, shape index: {}]   ;;  %s1688_s9 = inlined_call_operand.hbm [shape: f32[128,128], index: 9, kind: input, shape index: {}]   ;;  %s1689_s10 = inlined_call_operand.vmem [shape: f32[1,128], index: 10, kind: input, shape index: {}]   ;;  %s1690_s11 = inlined_call_operand.hbm [shape: f32[128,128], index: 11, kind: input, shape index: {}]   ;;  %s1691_s12 = inlined_call_operand.vmem [shape: f32[1,128], index: 12, kind: input, shape index: {}]   ;;  %s1692_s13 = inlined_call_operand.hbm [shape: f32[128,128], index: 13, kind: input, shape index: {}]   ;;  %s1693_s14 = inlined_call_operand.hbm [shape: f32[128,128], index: 14, kind: input, shape index: {}]   ;;  %s1694_s15 = inlined_call_operand.vmem [shape: f32[1,128], index: 15, kind: input, shape index: {}]   ;;  %s1695_s16 = inlined_call_operand.hbm [shape: f32[8,128], index: 16, kind: output, shape index: {}]  }
   0x1   :  { %1696 = sst [smem:[#allocation24_spill]] %s1679_s0 }
   0x2   :  { %21 = vsyncpa [#allocation3], 0 }
   0x3   :  { %22 = vsyncpa [#allocation6], 0 }
   0x4   :  { %23 = vsyncpa [#allocation9], 0 }
   0x5   :  { %24 = vsyncpa [#allocation12], 0 }
   0x6   :  { %25 = vsyncpa [#allocation15], 0 }
   0x7   :  { %26 = vsyncpa [#allocation4], 0  ;;  %s1407_s21 = smov [#allocation5]   ;;  %s1408_s23 = smov [#allocation8]  }
   0x8   :  { %s43_s22 = sshll.u32 %s1407_s21, 4  ;;  %s70_s24 = sshll.u32 %s1408_s23, 4  ;;  %s44_s22 = int_to_ptr.vmem [resolvable:$true] %s43_s22  ;;  %s71_s24 = int_to_ptr.vmem [resolvable:$true] %s70_s24 }
   0x9   :  { %s1203_s25 = scalar_lea.vmem %s44_s22, 128  ;;  %p1208_p1 = scmp.lt.s32.totalorder %s44_s22, %s44_s22 }
   0xa   :  { %p1204_p0 = scmp.ne.s32.totalorder %s44_s22, %s1203_s25  ;;  %p1209_p2 = scmp.lt.s32.totalorder %s1203_s25, %s1203_s25 }
   0xc   :  { %p1210_p3 = por %p1209_p2, %p1208_p1 }
   0xe   :  { %p1211_p4 = pnand %p1210_p3, %p1204_p0 }
  0x10   :  { %1214 = shalt.err (!%p1211_p4)
}
  0x11   :  { %46 = dma.hbm_to_vmem [thread:$0]  %s1680_s1, 128, %s44_s22, [#allocation6]  }
  0x12   :  { %s1223_s28 = scalar_lea.vmem %s71_s24, 4096  ;;  %p1228_p6 = scmp.lt.s32.totalorder %s71_s24, %s71_s24 }
  0x13   :  { %p1224_p5 = scmp.ne.s32.totalorder %s71_s24, %s1223_s28  ;;  %p1229_p7 = scmp.lt.s32.totalorder %s1223_s28, %s1223_s28 }
  0x15   :  { %p1230_p8 = por %p1229_p7, %p1228_p6 }
  0x17   :  { %p1231_p9 = pnand %p1230_p8, %p1224_p5 }
  0x19   :  { %1234 = shalt.err (!%p1231_p9)
}
  0x1a   :  { %s1409_s29 = smov 256   ;;  %s1410_s30 = smov 16  }
  0x1b   :  { %76 = dma.hbm_to_vmem [thread:$0]  %s1685_s6, 4096, %s71_s24, [#allocation9], %s1409_s29, %s1409_s29, %s1410_s30  }
  0x1c   :  { %s1411_s18 = smov [#allocation11]   ;;  %s1412_s20 = smov [#allocation14]  }
  0x1d   :  { %s96_s19 = sshll.u32 %s1411_s18, 4  ;;  %s124_s1 = sshll.u32 %s1412_s20, 4  ;;  %s97_s19 = int_to_ptr.vmem [resolvable:$true] %s96_s19  ;;  %s125_s1 = int_to_ptr.vmem [resolvable:$true] %s124_s1 }
  0x1e   :  { %s1243_s21 = scalar_lea.vmem %s97_s19, 2048  ;;  %p1248_p11 = scmp.lt.s32.totalorder %s97_s19, %s97_s19 }
  0x1f   :  { %p1244_p10 = scmp.ne.s32.totalorder %s97_s19, %s1243_s21  ;;  %p1249_p12 = scmp.lt.s32.totalorder %s1243_s21, %s1243_s21 }
  0x21   :  { %p1250_p13 = por %p1249_p12, %p1248_p11 }
  0x23   :  { %p1251_p0 = pnand %p1250_p13, %p1244_p10 }
  0x25   :  { %1254 = shalt.err (!%p1251_p0)
}
  0x26   :  { %s1413_s22 = smov 128   ;;  %s1414_s23 = smov 8  }
  0x27   :  { %102 = dma.hbm_to_vmem [thread:$0]  %s1688_s9, 2048, %s97_s19, [#allocation12], %s1413_s22, %s1413_s22, %s1414_s23  }
  0x28   :  { %s1263_s24 = scalar_lea.vmem %s125_s1, 2048  ;;  %p1268_p2 = scmp.lt.s32.totalorder %s125_s1, %s125_s1 }
  0x29   :  { %p1264_p1 = scmp.ne.s32.totalorder %s125_s1, %s1263_s24  ;;  %p1269_p3 = scmp.lt.s32.totalorder %s1263_s24, %s1263_s24 }
  0x2b   :  { %p1270_p4 = por %p1269_p3, %p1268_p2 }
  0x2d   :  { %p1271_p5 = pnand %p1270_p4, %p1264_p1 }
  0x2f   :  { %1274 = shalt.err (!%p1271_p5)
}
  0x30   :  { %130 = dma.hbm_to_vmem [thread:$0]  %s1692_s13, 2048, %s125_s1, [#allocation15], %s1413_s22, %s1413_s22, %s1414_s23  }
  0x31   :  { %s1415_s28 = smov [#allocation2]   ;;  %s1416_s17 = smov [#allocation7]  }
  0x32   :  { %s33_s0 = sshll.u32 %s1415_s28, 4  ;;  %s52_s18 = sshll.u32 %s1416_s17, 4  ;;  %s34_s0 = int_to_ptr.vmem [resolvable:$true] %s33_s0  ;;  %s53_s18 = int_to_ptr.vmem [resolvable:$true] %s52_s18 }
  0x33   :  { %s1283_s9 = scalar_lea.vmem %s34_s0, 128  ;;  %p1288_p7 = scmp.lt.s32.totalorder %s34_s0, %s34_s0 }
  0x34   :  { %p1284_p6 = scmp.ne.s32.totalorder %s34_s0, %s1283_s9  ;;  %p1289_p8 = scmp.lt.s32.totalorder %s1283_s9, %s1283_s9 }
  0x36   :  { %p1290_p9 = por %p1289_p8, %p1288_p7 }
  0x38   :  { %p1291_p10 = pnand %p1290_p9, %p1284_p6 }
  0x3a   :  { %1294 = shalt.err (!%p1291_p10)
}
  0x3b   :  { %s1697_s21 = sld [smem:[#allocation24_spill]]  ;;  %s1303_s25 = scalar_lea.vmem %s53_s18, 2048 }
  0x3c   :  { %p1304_p11 = scmp.ne.s32.totalorder %s53_s18, %s1303_s25  ;;  %p1308_p12 = scmp.lt.s32.totalorder %s53_s18, %s53_s18 }
  0x3d   :  { %p1309_p13 = scmp.lt.s32.totalorder %s1303_s25, %s1303_s25 }
  0x3f   :  { %p1310_p0 = por %p1309_p13, %p1308_p12 }
  0x41   :  { %36 = dma.hbm_to_vmem [thread:$0]  %s1697_s21, 128, %s34_s0, [#allocation3]  }
  0x42   :  { %p1311_p1 = pnand %p1310_p0, %p1304_p11 }
  0x44   :  { %1314 = shalt.err (!%p1311_p1)
}
  0x45   :  { %58 = dma.hbm_to_vmem [thread:$0]  %s1681_s2, 2048, %s53_s18, [#allocation6], %s1413_s22, %s1413_s22, %s1414_s23  }
  0x46   :  { %s1417_s6 = smov [#allocation10]   ;;  %s1418_s26 = smov [#allocation13]  }
  0x47   :  { %s82_s24 = sshll.u32 %s1417_s6, 4  ;;  %s110_s27 = sshll.u32 %s1418_s26, 4  ;;  %s83_s24 = int_to_ptr.vmem [resolvable:$true] %s82_s24  ;;  %s111_s27 = int_to_ptr.vmem [resolvable:$true] %s110_s27 }
  0x48   :  { %s1323_s28 = scalar_lea.vmem %s83_s24, 4096  ;;  %p1328_p3 = scmp.lt.s32.totalorder %s83_s24, %s83_s24 }
  0x49   :  { %p1324_p2 = scmp.ne.s32.totalorder %s83_s24, %s1323_s28  ;;  %p1329_p4 = scmp.lt.s32.totalorder %s1323_s28, %s1323_s28 }
  0x4b   :  { %p1330_p5 = por %p1329_p4, %p1328_p3 }
  0x4d   :  { %p1331_p6 = pnand %p1330_p5, %p1324_p2 }
  0x4f   :  { %1334 = shalt.err (!%p1331_p6)
}
  0x50   :  { %88 = dma.hbm_to_vmem [thread:$0]  %s1686_s7, 4096, %s83_s24, [#allocation9], %s1409_s29, %s1409_s29, %s1410_s30  }
  0x51   :  { %s1343_s2 = scalar_lea.vmem %s111_s27, 2048  ;;  %p1348_p8 = scmp.lt.s32.totalorder %s111_s27, %s111_s27 }
  0x52   :  { %p1344_p7 = scmp.ne.s32.totalorder %s111_s27, %s1343_s2  ;;  %p1349_p9 = scmp.lt.s32.totalorder %s1343_s2, %s1343_s2 }
  0x54   :  { %p1350_p10 = por %p1349_p9, %p1348_p8 }
  0x56   :  { %p1351_p11 = pnand %p1350_p10, %p1344_p7 }
  0x58   :  { %1354 = shalt.err (!%p1351_p11)
}
  0x59   :  { %116 = dma.hbm_to_vmem [thread:$0]  %s1690_s11, 2048, %s111_s27, [#allocation12], %s1413_s22, %s1413_s22, %s1414_s23  }
  0x5a   :  { %s1419_s19 = smov [#allocation16]  }
  0x5b   :  { %s136_s20 = sshll.u32 %s1419_s19, 4  ;;  %s137_s20 = int_to_ptr.vmem [resolvable:$true] %s136_s20 }
  0x5c   :  { %s1363_s21 = scalar_lea.vmem %s137_s20, 2048  ;;  %p1368_p13 = scmp.lt.s32.totalorder %s137_s20, %s137_s20 }
  0x5d   :  { %p1364_p12 = scmp.ne.s32.totalorder %s137_s20, %s1363_s21  ;;  %p1369_p0 = scmp.lt.s32.totalorder %s1363_s21, %s1363_s21 }
  0x5f   :  { %p1370_p1 = por %p1369_p0, %p1368_p13 }
  0x61   :  { %p1371_p2 = pnand %p1370_p1, %p1364_p12 }
  0x63   :  { %1374 = shalt.err (!%p1371_p2)
}
  0x64   :  { %142 = dma.hbm_to_vmem [thread:$0]  %s1693_s14, 2048, %s137_s20, [#allocation15], %s1413_s22, %s1413_s22, %s1414_s23  }
  0x65   :  { %1395 = dma.done.wait [#allocation3], 128  }
  0x66   :  { %1396 = vsyncadd [#allocation3], 4294967168 }
  0x67   :  { %1397 = dma.done.wait [#allocation6], 2176  }
  0x68   :  { %1398 = vsyncadd [#allocation6], 4294965120 }
  0x69   :  { %1399 = dma.done.wait [#allocation9], 8192  }
  0x6a   :  { %1400 = vsyncadd [#allocation9], 4294959104 }
  0x6b   :  { %1401 = dma.done.wait [#allocation12], 4096  }
  0x6c   :  { %1402 = vsyncadd [#allocation12], 4294963200 }
  0x6d   :  { %1403 = dma.done.wait [#allocation15], 4096  }
  0x6e   :  { %1404 = vsyncadd [#allocation15], 4294963200  ;;  %v1420_v0 = vmov 0.0   ;;  %vm1421_vm0 = vmmov 0   ;;  %v189_v1 = vld [vmem:[#allocation7 + $0x78] sm:$0xff]  ;;  %v188_v2 = vld [vmem:[#allocation7 + $0x70] sm:$0xff]  ;;  %v270_v22 = vlaneseq }
  0x6f   :  { %1000 = vmatprep.subr.mxu0 %v1420_v0  ;;  %1032 = vmatprep.mubr.msk.f32.mxu0 %vm1421_vm0, %v1420_v0  ;;  %v187_v3 = vld [vmem:[#allocation7 + $0x68] sm:$0xff]  ;;  %v186_v4 = vld [vmem:[#allocation7 + $0x60] sm:$0xff]  ;;  %v185_v5 = vld [vmem:[#allocation7 + $0x58] sm:$0xff] }
  0x70   :  { %427 = vmatprep.mubr.f32.mxu1 %v1420_v0  ;;  %1001 = vmatpush3.msra.mxu0 %v189_v1  ;;  %v184_v6 = vld [vmem:[#allocation7 + $0x50] sm:$0xff]  ;;  %v183_v7 = vld [vmem:[#allocation7 + $0x48] sm:$0xff]  ;;  %v182_v8 = vld [vmem:[#allocation7 + $0x40] sm:$0xff]  ;;  %v271_v23 = vand.u32 127, %v270_v22 }
  0x71   :  { %1002 = vmatprep.subr.mxu0 %v1420_v0  ;;  %v181_v9 = vld [vmem:[#allocation7 + $0x38] sm:$0xff]  ;;  %v180_v10 = vld [vmem:[#allocation7 + $0x30] sm:$0xff]  ;;  %v179_v11 = vld [vmem:[#allocation7 + $0x28] sm:$0xff] }
  0x72   :  { %1003 = vmatpush3.msra.mxu0 %v188_v2  ;;  %v178_v12 = vld [vmem:[#allocation7 + $0x20] sm:$0xff]  ;;  %v177_v13 = vld [vmem:[#allocation7 + $0x18] sm:$0xff]  ;;  %v176_v14 = vld [vmem:[#allocation7 + $0x10] sm:$0xff]  ;;  %vm272_vm1 = vcmp.lt.s32.totalorder %v271_v23, 16 }
  0x73   :  { %1004 = vmatprep.subr.mxu0 %v1420_v0  ;;  %v175_v15 = vld [vmem:[#allocation7 + $0x8] sm:$0xff]  ;;  %v174_v16 = vld [vmem:[#allocation7] sm:$0xff]  ;;  %v172_v17 = vld [vmem:[#allocation2] sm:$0xff] }
  0x74   :  { %1005 = vmatpush3.msra.mxu0 %v187_v3  ;;  %v909_v18 = vld [vmem:[%s1682_s3] ss:$0 sm:$0xff]  ;;  %v362_v29 = vld [vmem:[#allocation10 + $0xf8] sm:$0xff]  ;;  %v360_v31 = vld [vmem:[#allocation10 + $0xe8] sm:$0xff] }
  0x75   :  { %1006 = vmatprep.subr.mxu0 %v1420_v0  ;;  %363 = vmatprep.subr.mxu1 %v362_v29  ;;  %v361_v30 = vld [vmem:[#allocation10 + $0xf0] sm:$0xff]  ;;  %v330_v32 = vld [vmem:[#allocation8 + $0xf8] sm:$0xff]  ;;  %v359_v33 = vld [vmem:[#allocation10 + $0xe0] sm:$0xff] }
  0x76   :  { %1007 = vmatpush3.msra.mxu0 %v186_v4  ;;  %364 = vmatpush1.msra.mxu1 %v361_v30  ;;  %v329_v34 = vld [vmem:[#allocation8 + $0xf0] sm:$0xff]  ;;  %v358_v35 = vld [vmem:[#allocation10 + $0xd8] sm:$0xff]  ;;  %v328_v36 = vld [vmem:[#allocation8 + $0xe8] sm:$0xff] }
  0x77   :  { %1008 = vmatprep.subr.mxu0 %v1420_v0  ;;  %365 = vmatprep.subr.mxu1 %v360_v31  ;;  %v357_v37 = vld [vmem:[#allocation10 + $0xd0] sm:$0xff]  ;;  %v327_v38 = vld [vmem:[#allocation8 + $0xe0] sm:$0xff]  ;;  %v356_v39 = vld [vmem:[#allocation10 + $0xc8] sm:$0xff] }
  0x78   :  { %1009 = vmatpush3.msra.mxu0 %v185_v5  ;;  %366 = vmatpush1.msra.mxu1 %v359_v33  ;;  %v326_v40 = vld [vmem:[#allocation8 + $0xd8] sm:$0xff]  ;;  %v355_v41 = vld [vmem:[#allocation10 + $0xc0] sm:$0xff]  ;;  %v325_v42 = vld [vmem:[#allocation8 + $0xd0] sm:$0xff] }
  0x79   :  { %1010 = vmatprep.subr.mxu0 %v1420_v0  ;;  %367 = vmatprep.subr.mxu1 %v358_v35  ;;  %v354_v43 = vld [vmem:[#allocation10 + $0xb8] sm:$0xff]  ;;  %v324_v44 = vld [vmem:[#allocation8 + $0xc8] sm:$0xff]  ;;  %v353_v45 = vld [vmem:[#allocation10 + $0xb0] sm:$0xff] }
  0x7a   :  { %1011 = vmatpush3.msra.mxu0 %v184_v6  ;;  %368 = vmatpush1.msra.mxu1 %v357_v37  ;;  %v323_v46 = vld [vmem:[#allocation8 + $0xc0] sm:$0xff]  ;;  %v352_v47 = vld [vmem:[#allocation10 + $0xa8] sm:$0xff]  ;;  %v322_v48 = vld [vmem:[#allocation8 + $0xb8] sm:$0xff] }
  0x7b   :  { %1012 = vmatprep.subr.mxu0 %v1420_v0  ;;  %369 = vmatprep.subr.mxu1 %v356_v39  ;;  %v351_v49 = vld [vmem:[#allocation10 + $0xa0] sm:$0xff]  ;;  %v321_v50 = vld [vmem:[#allocation8 + $0xb0] sm:$0xff]  ;;  %v350_v51 = vld [vmem:[#allocation10 + $0x98] sm:$0xff] }
  0x7c   :  { %1013 = vmatpush3.msra.mxu0 %v183_v7  ;;  %370 = vmatpush1.msra.mxu1 %v355_v41  ;;  %v320_v52 = vld [vmem:[#allocation8 + $0xa8] sm:$0xff]  ;;  %v349_v53 = vld [vmem:[#allocation10 + $0x90] sm:$0xff]  ;;  %v319_v54 = vld [vmem:[#allocation8 + $0xa0] sm:$0xff] }
  0x7d   :  { %1014 = vmatprep.subr.mxu0 %v1420_v0  ;;  %371 = vmatprep.subr.mxu1 %v354_v43  ;;  %v348_v55 = vld [vmem:[#allocation10 + $0x88] sm:$0xff]  ;;  %v318_v56 = vld [vmem:[#allocation8 + $0x98] sm:$0xff]  ;;  %v347_v57 = vld [vmem:[#allocation10 + $0x80] sm:$0xff] }
  0x7e   :  { %1015 = vmatpush3.msra.mxu0 %v182_v8  ;;  %372 = vmatpush1.msra.mxu1 %v353_v45  ;;  %v317_v58 = vld [vmem:[#allocation8 + $0x90] sm:$0xff]  ;;  %v346_v59 = vld [vmem:[#allocation10 + $0x78] sm:$0xff]  ;;  %v316_v60 = vld [vmem:[#allocation8 + $0x88] sm:$0xff] }
  0x7f   :  { %1016 = vmatprep.subr.mxu0 %v1420_v0  ;;  %373 = vmatprep.subr.mxu1 %v352_v47  ;;  %v345_v61 = vld [vmem:[#allocation10 + $0x70] sm:$0xff]  ;;  %v315_v62 = vld [vmem:[#allocation8 + $0x80] sm:$0xff]  ;;  %v344_v63 = vld [vmem:[#allocation10 + $0x68] sm:$0xff] }
  0x80   :  { %1017 = vmatpush3.msra.mxu0 %v181_v9  ;;  %374 = vmatpush1.msra.mxu1 %v351_v49  ;;  %v314_v1 = vld [vmem:[#allocation8 + $0x78] sm:$0xff]  ;;  %v343_v2 = vld [vmem:[#allocation10 + $0x60] sm:$0xff]  ;;  %v313_v3 = vld [vmem:[#allocation8 + $0x70] sm:$0xff] }
  0x81   :  { %1018 = vmatprep.subr.mxu0 %v1420_v0  ;;  %375 = vmatprep.subr.mxu1 %v350_v51  ;;  %v342_v4 = vld [vmem:[#allocation10 + $0x58] sm:$0xff]  ;;  %v312_v5 = vld [vmem:[#allocation8 + $0x68] sm:$0xff]  ;;  %v341_v6 = vld [vmem:[#allocation10 + $0x50] sm:$0xff] }
  0x82   :  { %1019 = vmatpush3.msra.mxu0 %v180_v10  ;;  %376 = vmatpush1.msra.mxu1 %v349_v53  ;;  %v311_v7 = vld [vmem:[#allocation8 + $0x60] sm:$0xff]  ;;  %v340_v8 = vld [vmem:[#allocation10 + $0x48] sm:$0xff]  ;;  %v310_v9 = vld [vmem:[#allocation8 + $0x58] sm:$0xff] }
  0x83   :  { %1020 = vmatprep.subr.mxu0 %v1420_v0  ;;  %377 = vmatprep.subr.mxu1 %v348_v55  ;;  %v339_v10 = vld [vmem:[#allocation10 + $0x40] sm:$0xff]  ;;  %v333_v23 = vld [vmem:[#allocation10 + $0x10] sm:$0xff]  ;;  %v173_v30 = vld [vmem:[#allocation5] sm:$0xff] }
  0x84   :  { %1021 = vmatpush3.msra.mxu0 %v179_v11  ;;  %378 = vmatpush1.msra.mxu1 %v347_v57  ;;  %v309_v11 = vld [vmem:[#allocation8 + $0x50] sm:$0xff]  ;;  %v300_v31 = vld [vmem:[#allocation8 + $0x8] sm:$0xff]  ;;  %v536_v33 = vld [vmem:[#allocation11 + $0x78] sm:$0xff] }
  0x85   :  { %1022 = vmatprep.subr.mxu0 %v1420_v0  ;;  %379 = vmatprep.subr.mxu1 %v346_v59  ;;  %v301_v29 = vld [vmem:[#allocation8 + $0x10] sm:$0xff]  ;;  %v534_v35 = vld [vmem:[#allocation11 + $0x68] sm:$0xff]  ;;  %v532_v37 = vld [vmem:[#allocation11 + $0x58] sm:$0xff] }
  0x86   :  { %1023 = vmatpush3.msra.mxu0 %v178_v12  ;;  %380 = vmatpush1.msra.mxu1 %v345_v61  ;;  %v338_v12 = vld [vmem:[#allocation10 + $0x38] sm:$0xff]  ;;  %v530_v39 = vld [vmem:[#allocation11 + $0x48] sm:$0xff]  ;;  %v910_v49 = vld [vmem:[%s1683_s4] ss:$0 sm:$0xff] }
  0x87   :  { %1024 = vmatprep.subr.mxu0 %v1420_v0  ;;  %381 = vmatprep.subr.mxu1 %v344_v63  ;;  %v528_v41 = vld [vmem:[#allocation11 + $0x38] sm:$0xff]  ;;  %v526_v43 = vld [vmem:[#allocation11 + $0x28] sm:$0xff]  ;;  %v911_v51 = vld [vmem:[%s1684_s5] ss:$0 sm:$0xff] }
  0x88   :  { %1025 = vmatpush3.msra.mxu0 %v177_v13  ;;  %382 = vmatpush1.msra.mxu1 %v343_v2  ;;  %v308_v13 = vld [vmem:[#allocation8 + $0x48] sm:$0xff]  ;;  %v625_v59 = vld [vmem:[#allocation13 + $0x50] sm:$0xff]  ;;  %v623_v61 = vld [vmem:[#allocation13 + $0x40] sm:$0xff] }
  0x89   :  { %1026 = vmatprep.subr.mxu0 %v1420_v0  ;;  %383 = vmatprep.subr.mxu1 %v342_v4  ;;  %v628_v57 = vld [vmem:[#allocation13 + $0x68] sm:$0xff]  ;;  %v621_v63 = vld [vmem:[#allocation13 + $0x30] sm:$0xff]  ;;  %v524_v2 = vld [vmem:[#allocation11 + $0x18] sm:$0xff] }
  0x8a   :  { %1027 = vmatpush3.msra.mxu0 %v176_v14  ;;  %384 = vmatpush1.msra.mxu1 %v341_v6  ;;  %v337_v14 = vld [vmem:[#allocation10 + $0x30] sm:$0xff]  ;;  %v522_v6 = vld [vmem:[#allocation11 + $0x8] sm:$0xff] }
  0x8b   :  { %1028 = vmatprep.subr.mxu0 %v1420_v0  ;;  %385 = vmatprep.subr.mxu1 %v340_v8  ;;  %v523_v4 = vld [vmem:[#allocation11 + $0x10] sm:$0xff]  ;;  %v521_v8 = vld [vmem:[#allocation11] sm:$0xff] }
  0x8c   :  { %1029 = vmatpush3.msra.mxu0 %v175_v15  ;;  %386 = vmatpush1.msra.mxu1 %v339_v10  ;;  %v307_v15 = vld [vmem:[#allocation8 + $0x40] sm:$0xff] }
  0x8d   :  { %1030 = vmatprep.subr.mxu0 %v1420_v0  ;;  %387 = vmatprep.subr.mxu1 %v338_v12  ;;  %v615_v10 = vld [vmem:[#allocation13] sm:$0xff] }
  0x8e   :  { %1031 = vmatpush3.msra.mxu0 %v174_v16  ;;  %v336_v16 = vld [vmem:[#allocation10 + $0x28] sm:$0xff]  ;;  %388 = vmatpush1.msra.mxu1 %v337_v14 }
  0x8f   :  { %1033 = vmatmul.mubr.f32.vlgmr.msra.gmra.mxu0 %v172_v17  ;;  %434 = vmatprep.subr.mxu0 %v330_v32  ;;  %v306_v17 = vld [vmem:[#allocation8 + $0x38] sm:$0xff]  ;;  %v299_v32 = vld [vmem:[#allocation8] sm:$0xff] }
  0x90   :  { %498 = vmatprep.mubr.f32.mxu0 %v1420_v0  ;;  %435 = vmatpush1.msra.mxu0 %v329_v34  ;;  %v535_v34 = vld [vmem:[#allocation11 + $0x70] sm:$0xff] }
  0x91   :  { %436 = vmatprep.subr.mxu0 %v328_v36  ;;  %389 = vmatprep.subr.mxu1 %v336_v16  ;;  %v533_v36 = vld [vmem:[#allocation11 + $0x60] sm:$0xff] }
  0x92   :  { %437 = vmatpush1.msra.mxu0 %v327_v38  ;;  %v531_v38 = vld [vmem:[#allocation11 + $0x50] sm:$0xff] }
  0x93   :  { %438 = vmatprep.subr.mxu0 %v326_v40  ;;  %v529_v40 = vld [vmem:[#allocation11 + $0x40] sm:$0xff] }
  0x94   :  { %439 = vmatpush1.msra.mxu0 %v325_v42  ;;  %v527_v42 = vld [vmem:[#allocation11 + $0x30] sm:$0xff] }
  0x95   :  { %440 = vmatprep.subr.mxu0 %v324_v44  ;;  %v525_v44 = vld [vmem:[#allocation11 + $0x20] sm:$0xff] }
  0x96   :  { %441 = vmatpush1.msra.mxu0 %v323_v46 }
  0x97   :  { %442 = vmatprep.subr.mxu0 %v322_v48 }
  0x98   :  { %443 = vmatpush1.msra.mxu0 %v321_v50 }
  0x99   :  { %444 = vmatprep.subr.mxu0 %v320_v52 }
  0x9a   :  { %445 = vmatpush1.msra.mxu0 %v319_v54  ;;  %v630_v54 = vld [vmem:[#allocation13 + $0x78] sm:$0xff] }
  0x9b   :  { %446 = vmatprep.subr.mxu0 %v318_v56  ;;  %v629_v56 = vld [vmem:[#allocation13 + $0x70] sm:$0xff] }
  0x9c   :  { %447 = vmatpush1.msra.mxu0 %v317_v58  ;;  %v626_v58 = vld [vmem:[#allocation13 + $0x58] sm:$0xff] }
  0x9d   :  { %448 = vmatprep.subr.mxu0 %v316_v60  ;;  %v624_v60 = vld [vmem:[#allocation13 + $0x48] sm:$0xff] }
  0x9e   :  { %449 = vmatpush1.msra.mxu0 %v315_v62  ;;  %v622_v62 = vld [vmem:[#allocation13 + $0x38] sm:$0xff] }
  0x9f   :  { %450 = vmatprep.subr.mxu0 %v314_v1  ;;  %v620_v1 = vld [vmem:[#allocation13 + $0x28] sm:$0xff] }
  0xa0   :  { %451 = vmatpush1.msra.mxu0 %v313_v3  ;;  %v619_v3 = vld [vmem:[#allocation13 + $0x20] sm:$0xff] }
  0xa1   :  { %452 = vmatprep.subr.mxu0 %v312_v5  ;;  %v618_v5 = vld [vmem:[#allocation13 + $0x18] sm:$0xff] }
  0xa2   :  { %453 = vmatpush1.msra.mxu0 %v311_v7  ;;  %v617_v7 = vld [vmem:[#allocation13 + $0x10] sm:$0xff] }
  0xa3   :  { %454 = vmatprep.subr.mxu0 %v310_v9  ;;  %v616_v9 = vld [vmem:[#allocation13 + $0x8] sm:$0xff] }
  0xa4   :  { %455 = vmatpush1.msra.mxu0 %v309_v11  ;;  %v508_v11 = vshrl.u32 %v270_v22, 7  ;;  %v724_v22 = vld [vmem:[#allocation14 + $0x78] sm:$0xff] }
  0xa5   :  { %456 = vmatprep.subr.mxu0 %v308_v13  ;;  %v505_v13 = vld [vmem:[%s1687_s8] sm:$0x3] }
  0xa6   :  { %457 = vmatpush1.msra.mxu0 %v307_v15  ;;  %v509_v12 = vsub.s32 0, %v508_v11  ;;  %v513_v14 = vsub.s32 1, %v508_v11 }
  0xa7   :  { %458 = vmatprep.subr.mxu0 %v306_v17 }
  0xa8   :  { %v510_v16 = vrot.slane %v505_v13, %v509_v12 }
 0x14f   :  { %v263_v19 = vpop.f32.mrf.mxu0 }
 0x150   :  { %v264_v20 = vadd.f32 %v909_v18, %v263_v19  ;;  %v335_v18 = vld [vmem:[#allocation10 + $0x20] sm:$0xff]  ;;  %v305_v19 = vld [vmem:[#allocation8 + $0x30] sm:$0xff] }
 0x151   :  { %v1034_v21 = vpop.f32.mrf.mxu0  ;;  %390 = vmatpush1.msra.mxu1 %v335_v18  ;;  %459 = vmatpush1.msra.mxu0 %v305_v19  ;;  %v514_v19 = vrot.slane %v505_v13, %v513_v14 }
 0x152   :  { %267 = vadd.xlane.f32.xlu0 %v264_v20  ;;  %v304_v21 = vld [vmem:[#allocation8 + $0x28] sm:$0xff] }
 0x153   :  { %460 = vmatprep.subr.mxu0 %v304_v21 }
 0x1db   :  { %v268_v24 = vpop.xlane.xlu0 %267 }
 0x1dc   :  { %v269_v25 = vmul.f32 0.0625, %v268_v24  ;;  %v303_v24 = vld [vmem:[#allocation8 + $0x20] sm:$0xff] }
 0x1dd   :  { %461 = vmatpush1.msra.mxu0 %v303_v24 }
 0x1de   :  { %v273_v26 = vsub.f32 %v264_v20, %v269_v25  ;;  %v334_v20 = vld [vmem:[#allocation10 + $0x18] sm:$0xff]  ;;  %v332_v25 = vld [vmem:[#allocation10 + $0x8] sm:$0xff] }
 0x1df   :  { %391 = vmatprep.subr.mxu1 %v334_v20 }
 0x1e0   :  { %v1580_v27 = vsel %vm272_vm1, %v273_v26, 0.0  ;;  %v302_v26 = vld [vmem:[#allocation8 + $0x18] sm:$0xff]  ;;  %392 = vmatpush1.msra.mxu1 %v333_v23 }
 0x1e1   :  { %v275_v28 = vmul.f32 %v1580_v27, %v1580_v27  ;;  %393 = vmatprep.subr.mxu1 %v332_v25  ;;  %462 = vmatprep.subr.mxu0 %v302_v26 }
 0x1e2   :  { %463 = vmatpush1.msra.mxu0 %v301_v29 }
 0x1e3   :  { %276 = vadd.xlane.f32.xlu0 %v275_v28  ;;  %v331_v28 = vld [vmem:[#allocation10] sm:$0xff]  ;;  %464 = vmatprep.subr.mxu0 %v300_v31  ;;  %v723_v31 = vld [vmem:[#allocation14 + $0x70] sm:$0xff] }
 0x1e4   :  { %394 = vmatpush1.msra.mxu1 %v331_v28  ;;  %465 = vmatpush1.msra.mxu0 %v299_v32  ;;  %v740_v28 = vld [vmem:[#allocation16 + $0x78] sm:$0xff]  ;;  %v738_v32 = vld [vmem:[#allocation16 + $0x68] sm:$0xff] }
 0x1e5   :  { %428 = vmatmul.mubr.f32.vlgmr.msra.gmra.mxu1 %v173_v30  ;;  %1035 = vmatprep.subr.mxu1 %v1420_v0  ;;  %v739_v30 = vld [vmem:[#allocation16 + $0x70] sm:$0xff] }
 0x1e6   :  { %1070 = vmatprep.subr.mxu0 %v1420_v0  ;;  %1067 = vmatprep.mubr.msk.f32.mxu1 %vm1421_vm0, %v1420_v0 }
 0x1e7   :  { %1036 = vmatpush3.msra.mxu1 %v536_v33  ;;  %v722_v33 = vld [vmem:[#allocation14 + $0x68] sm:$0xff] }
 0x1e8   :  { %1037 = vmatprep.subr.mxu1 %v1420_v0 }
 0x1e9   :  { %1038 = vmatpush3.msra.mxu1 %v535_v34  ;;  %v737_v34 = vld [vmem:[#allocation16 + $0x60] sm:$0xff] }
 0x1ea   :  { %1039 = vmatprep.subr.mxu1 %v1420_v0 }
 0x1eb   :  { %1040 = vmatpush3.msra.mxu1 %v534_v35  ;;  %v721_v35 = vld [vmem:[#allocation14 + $0x60] sm:$0xff] }
 0x1ec   :  { %1041 = vmatprep.subr.mxu1 %v1420_v0 }
 0x1ed   :  { %1042 = vmatpush3.msra.mxu1 %v533_v36  ;;  %v736_v36 = vld [vmem:[#allocation16 + $0x58] sm:$0xff] }
 0x1ee   :  { %1043 = vmatprep.subr.mxu1 %v1420_v0 }
 0x1ef   :  { %1044 = vmatpush3.msra.mxu1 %v532_v37  ;;  %v720_v37 = vld [vmem:[#allocation14 + $0x58] sm:$0xff] }
 0x1f0   :  { %1045 = vmatprep.subr.mxu1 %v1420_v0 }
 0x1f1   :  { %1046 = vmatpush3.msra.mxu1 %v531_v38  ;;  %v735_v38 = vld [vmem:[#allocation16 + $0x50] sm:$0xff] }
 0x1f2   :  { %1047 = vmatprep.subr.mxu1 %v1420_v0 }
 0x1f3   :  { %1048 = vmatpush3.msra.mxu1 %v530_v39  ;;  %v719_v39 = vld [vmem:[#allocation14 + $0x50] sm:$0xff] }
 0x1f4   :  { %1049 = vmatprep.subr.mxu1 %v1420_v0 }
 0x1f5   :  { %1050 = vmatpush3.msra.mxu1 %v529_v40  ;;  %v734_v40 = vld [vmem:[#allocation16 + $0x48] sm:$0xff] }
 0x1f6   :  { %1051 = vmatprep.subr.mxu1 %v1420_v0 }
 0x1f7   :  { %1052 = vmatpush3.msra.mxu1 %v528_v41  ;;  %v718_v41 = vld [vmem:[#allocation14 + $0x48] sm:$0xff] }
 0x1f8   :  { %1053 = vmatprep.subr.mxu1 %v1420_v0 }
 0x1f9   :  { %1054 = vmatpush3.msra.mxu1 %v527_v42  ;;  %v733_v42 = vld [vmem:[#allocation16 + $0x40] sm:$0xff] }
 0x1fa   :  { %1055 = vmatprep.subr.mxu1 %v1420_v0 }
 0x1fb   :  { %1056 = vmatpush3.msra.mxu1 %v526_v43  ;;  %v717_v43 = vld [vmem:[#allocation14 + $0x40] sm:$0xff] }
 0x1fc   :  { %1057 = vmatprep.subr.mxu1 %v1420_v0 }
 0x1fd   :  { %1058 = vmatpush3.msra.mxu1 %v525_v44  ;;  %v732_v44 = vld [vmem:[#allocation16 + $0x38] sm:$0xff] }
 0x1fe   :  { %1059 = vmatprep.subr.mxu1 %v1420_v0 }
 0x1ff   :  { %1060 = vmatpush3.msra.mxu1 %v524_v2 }
 0x200   :  { %1061 = vmatprep.subr.mxu1 %v1420_v0 }
 0x201   :  { %1062 = vmatpush3.msra.mxu1 %v523_v4 }
 0x202   :  { %1063 = vmatprep.subr.mxu1 %v1420_v0 }
 0x203   :  { %1064 = vmatpush3.msra.mxu1 %v522_v6 }
 0x204   :  { %1065 = vmatprep.subr.mxu1 %v1420_v0 }
 0x205   :  { %1066 = vmatpush3.msra.mxu1 %v521_v8 }
 0x206   :  { %1105 = vmatprep.subr.mxu1 %v1420_v0 }
 0x26c   :  { %v277_v45 = vpop.xlane.xlu0 %276 }
 0x26d   :  { %v278_v46 = vmul.f32 0.0625, %v277_v45  ;;  %v716_v45 = vld [vmem:[#allocation14 + $0x38] sm:$0xff] }
 0x26f   :  { %v279_v47 = vadd.f32 1e-05, %v278_v46  ;;  %v731_v46 = vld [vmem:[#allocation16 + $0x30] sm:$0xff] }
 0x271   :  { %1191 = vrsqrt.f32 %v279_v47  ;;  %v715_v47 = vld [vmem:[#allocation14 + $0x30] sm:$0xff] }
 0x27e   :  { %v1192_v48 = vpop.eup %1191 }
 0x27f   :  { %v281_v50 = vmul.f32 %v1192_v48, %v1580_v27  ;;  %v627_v27 = vld [vmem:[#allocation13 + $0x60] sm:$0xff]  ;;  %v730_v48 = vld [vmem:[#allocation16 + $0x28] sm:$0xff] }
 0x281   :  { %v289_v52 = vmul.f32 %v910_v49, %v281_v50  ;;  %v714_v49 = vld [vmem:[#allocation14 + $0x28] sm:$0xff]  ;;  %v729_v50 = vld [vmem:[#allocation16 + $0x20] sm:$0xff] }
 0x283   :  { %v297_v53 = vadd.f32 %v911_v51, %v289_v52  ;;  %v713_v51 = vld [vmem:[#allocation14 + $0x20] sm:$0xff]  ;;  %v712_v52 = vld [vmem:[#allocation14 + $0x18] sm:$0xff] }
 0x285   :  { %1193 = vtanh.f32 %v297_v53  ;;  %v728_v53 = vld [vmem:[#allocation16 + $0x18] sm:$0xff] }
 0x292   :  { %v1194_v55 = vpop.eup %1193 }
 0x293   :  { %499 = vmatmul.mubr.f32.vlgmr.msra.gmra.mxu0 %v1194_v55  ;;  %v727_v55 = vld [vmem:[#allocation16 + $0x10] sm:$0xff] }
 0x294   :  { %1071 = vmatpush3.msra.mxu0 %v630_v54  ;;  %1102 = vmatprep.mubr.msk.f32.mxu0 %vm1421_vm0, %v1420_v0  ;;  %v711_v54 = vld [vmem:[#allocation14 + $0x10] sm:$0xff] }
 0x295   :  { %1072 = vmatprep.subr.mxu0 %v1420_v0 }
 0x296   :  { %1073 = vmatpush3.msra.mxu0 %v629_v56  ;;  %v710_v56 = vld [vmem:[#allocation14 + $0x8] sm:$0xff] }
 0x297   :  { %1074 = vmatprep.subr.mxu0 %v1420_v0 }
 0x298   :  { %1075 = vmatpush3.msra.mxu0 %v628_v57  ;;  %v726_v57 = vld [vmem:[#allocation16 + $0x8] sm:$0xff] }
 0x299   :  { %1076 = vmatprep.subr.mxu0 %v1420_v0 }
 0x29a   :  { %1077 = vmatpush3.msra.mxu0 %v627_v27  ;;  %v709_v27 = vld [vmem:[#allocation14] sm:$0xff] }
 0x29b   :  { %1078 = vmatprep.subr.mxu0 %v1420_v0 }
 0x29c   :  { %1079 = vmatpush3.msra.mxu0 %v626_v58  ;;  %v725_v58 = vld [vmem:[#allocation16] sm:$0xff] }
 0x29d   :  { %1080 = vmatprep.subr.mxu0 %v1420_v0 }
 0x29e   :  { %1081 = vmatpush3.msra.mxu0 %v625_v59  ;;  %v912_v59 = vld [vmem:[%s1689_s10] ss:$0 sm:$0xff]  ;;  %s1422_s10 = smov [#allocation17]  }
 0x29f   :  { %1082 = vmatprep.subr.mxu0 %v1420_v0  ;;  %s896_s26 = sshll.u32 %s1422_s10, 4  ;;  %s897_s26 = int_to_ptr.vmem [resolvable:$true] %s896_s26 }
 0x2a0   :  { %1083 = vmatpush3.msra.mxu0 %v624_v60  ;;  %p1380_p4 = scmp.lt.s32.totalorder %s897_s26, %s897_s26 }
 0x2a1   :  { %1084 = vmatprep.subr.mxu0 %v1420_v0 }
 0x2a2   :  { %1085 = vmatpush3.msra.mxu0 %v623_v61  ;;  %v913_v61 = vld [vmem:[%s1691_s12] ss:$0 sm:$0xff]  ;;  %s1375_s12 = scalar_lea.vmem %s897_s26, 128 }
 0x2a3   :  { %1086 = vmatprep.subr.mxu0 %v1420_v0  ;;  %p1376_p3 = scmp.ne.s32.totalorder %s897_s26, %s1375_s12  ;;  %p1381_p5 = scmp.lt.s32.totalorder %s1375_s12, %s1375_s12 }
 0x2a4   :  { %1087 = vmatpush3.msra.mxu0 %v622_v62 }
 0x2a5   :  { %1088 = vmatprep.subr.mxu0 %v1420_v0  ;;  %v429_v15 = vpop.f32.mrf.mxu1  ;;  %p1382_p6 = por %p1381_p5, %p1380_p4 }
 0x2a6   :  { %1089 = vmatpush3.msra.mxu0 %v621_v63 }
 0x2a7   :  { %1090 = vmatprep.subr.mxu0 %v1420_v0  ;;  %v431_v20 = vpop.f32.mrf.mxu1  ;;  %p1383_p7 = pnand %p1382_p6, %p1376_p3 }
 0x2a8   :  { %1091 = vmatpush3.msra.mxu0 %v620_v1 }
 0x2a9   :  { %1092 = vmatprep.subr.mxu0 %v1420_v0 }
 0x2aa   :  { %1093 = vmatpush3.msra.mxu0 %v619_v3 }
 0x2ab   :  { %1094 = vmatprep.subr.mxu0 %v1420_v0 }
 0x2ac   :  { %1095 = vmatpush3.msra.mxu0 %v618_v5 }
 0x2ad   :  { %1096 = vmatprep.subr.mxu0 %v1420_v0 }
 0x2ae   :  { %1097 = vmatpush3.msra.mxu0 %v617_v7  ;;  %v914_v7 = vld [vmem:[%s1694_s15] ss:$0 sm:$0xff] }
 0x2af   :  { %1098 = vmatprep.subr.mxu0 %v1420_v0 }
 0x2b0   :  { %1099 = vmatpush3.msra.mxu0 %v616_v9 }
 0x2b1   :  { %1100 = vmatprep.subr.mxu0 %v1420_v0 }
 0x2b2   :  { %1101 = vmatpush3.msra.mxu0 %v615_v10 }
 0x2b3   :  { %1140 = vmatprep.subr.mxu0 %v1420_v0 }
 0x353   :  { %v500_v17 = vpop.f32.mrf.mxu0 }
 0x354   :  { %v501_v18 = vadd.f32 %v500_v17, %v429_v15 }
 0x355   :  { %v502_v21 = vpop.f32.mrf.mxu0 }
 0x356   :  { %v517_v23 = vadd.f32 %v510_v16, %v501_v18  ;;  %v503_v24 = vadd.f32 %v502_v21, %v431_v20 }
 0x358   :  { %v519_v25 = vmax.f32 %v517_v23, 0.0  ;;  %v518_v26 = vadd.f32 %v514_v19, %v503_v24 }
 0x35a   :  { %v520_v29 = vmax.f32 %v518_v26, 0.0  ;;  %1068 = vmatmul.mubr.f32.vlgmr.msra.gmra.mxu1 %v519_v25 }
 0x35b   :  { %1106 = vmatpush3.msra.mxu1 %v740_v28  ;;  %1137 = vmatprep.mubr.msk.f32.mxu1 %vm1421_vm0, %v1420_v0 }
 0x35c   :  { %1103 = vmatmul.mubr.f32.vlgmr.msra.gmra.mxu0 %v520_v29  ;;  %1107 = vmatprep.subr.mxu1 %v1420_v0 }
 0x35d   :  { %1141 = vmatpush3.msra.mxu0 %v724_v22  ;;  %1108 = vmatpush3.msra.mxu1 %v739_v30 }
 0x35e   :  { %1142 = vmatprep.subr.mxu0 %v1420_v0  ;;  %1109 = vmatprep.subr.mxu1 %v1420_v0 }
 0x35f   :  { %1143 = vmatpush3.msra.mxu0 %v723_v31  ;;  %1110 = vmatpush3.msra.mxu1 %v738_v32 }
 0x360   :  { %1144 = vmatprep.subr.mxu0 %v1420_v0  ;;  %1111 = vmatprep.subr.mxu1 %v1420_v0 }
 0x361   :  { %1145 = vmatpush3.msra.mxu0 %v722_v33  ;;  %1112 = vmatpush3.msra.mxu1 %v737_v34 }
 0x362   :  { %1146 = vmatprep.subr.mxu0 %v1420_v0  ;;  %1113 = vmatprep.subr.mxu1 %v1420_v0 }
 0x363   :  { %1147 = vmatpush3.msra.mxu0 %v721_v35  ;;  %1114 = vmatpush3.msra.mxu1 %v736_v36 }
 0x364   :  { %1148 = vmatprep.subr.mxu0 %v1420_v0  ;;  %1115 = vmatprep.subr.mxu1 %v1420_v0 }
 0x365   :  { %1149 = vmatpush3.msra.mxu0 %v720_v37  ;;  %1116 = vmatpush3.msra.mxu1 %v735_v38 }
 0x366   :  { %1150 = vmatprep.subr.mxu0 %v1420_v0  ;;  %1117 = vmatprep.subr.mxu1 %v1420_v0 }
 0x367   :  { %1151 = vmatpush3.msra.mxu0 %v719_v39  ;;  %1118 = vmatpush3.msra.mxu1 %v734_v40 }
 0x368   :  { %1152 = vmatprep.subr.mxu0 %v1420_v0  ;;  %1119 = vmatprep.subr.mxu1 %v1420_v0 }
 0x369   :  { %1153 = vmatpush3.msra.mxu0 %v718_v41  ;;  %1120 = vmatpush3.msra.mxu1 %v733_v42 }
 0x36a   :  { %1154 = vmatprep.subr.mxu0 %v1420_v0  ;;  %1121 = vmatprep.subr.mxu1 %v1420_v0 }
 0x36b   :  { %1155 = vmatpush3.msra.mxu0 %v717_v43  ;;  %1122 = vmatpush3.msra.mxu1 %v732_v44 }
 0x36c   :  { %1156 = vmatprep.subr.mxu0 %v1420_v0  ;;  %1123 = vmatprep.subr.mxu1 %v1420_v0 }
 0x36d   :  { %1157 = vmatpush3.msra.mxu0 %v716_v45  ;;  %1124 = vmatpush3.msra.mxu1 %v731_v46 }
 0x36e   :  { %1158 = vmatprep.subr.mxu0 %v1420_v0  ;;  %1125 = vmatprep.subr.mxu1 %v1420_v0 }
 0x36f   :  { %1159 = vmatpush3.msra.mxu0 %v715_v47  ;;  %1126 = vmatpush3.msra.mxu1 %v730_v48 }
 0x370   :  { %1160 = vmatprep.subr.mxu0 %v1420_v0  ;;  %1127 = vmatprep.subr.mxu1 %v1420_v0 }
 0x371   :  { %1161 = vmatpush3.msra.mxu0 %v714_v49  ;;  %1128 = vmatpush3.msra.mxu1 %v729_v50 }
 0x372   :  { %1162 = vmatprep.subr.mxu0 %v1420_v0  ;;  %1129 = vmatprep.subr.mxu1 %v1420_v0 }
 0x373   :  { %1163 = vmatpush3.msra.mxu0 %v713_v51  ;;  %1172 = vmatprep.mubr.msk.f32.mxu0 %vm1421_vm0, %v1420_v0 }
 0x374   :  { %1164 = vmatprep.subr.mxu0 %v1420_v0  ;;  %1130 = vmatpush3.msra.mxu1 %v728_v53 }
 0x375   :  { %1165 = vmatpush3.msra.mxu0 %v712_v52  ;;  %1131 = vmatprep.subr.mxu1 %v1420_v0 }
 0x376   :  { %1166 = vmatprep.subr.mxu0 %v1420_v0  ;;  %1132 = vmatpush3.msra.mxu1 %v727_v55 }
 0x377   :  { %1167 = vmatpush3.msra.mxu0 %v711_v54  ;;  %1133 = vmatprep.subr.mxu1 %v1420_v0 }
 0x378   :  { %1168 = vmatprep.subr.mxu0 %v1420_v0  ;;  %1134 = vmatpush3.msra.mxu1 %v726_v57 }
 0x379   :  { %1169 = vmatpush3.msra.mxu0 %v710_v56  ;;  %1135 = vmatprep.subr.mxu1 %v1420_v0 }
 0x37a   :  { %1170 = vmatprep.subr.mxu0 %v1420_v0  ;;  %1136 = vmatpush3.msra.mxu1 %v725_v58 }
 0x37b   :  { %1171 = vmatpush3.msra.mxu0 %v709_v27 }
 0x41a   :  { %v610_v60 = vpop.f32.mrf.mxu1 }
 0x41b   :  { %v611_v62 = vadd.f32 %v912_v59, %v610_v60 }
 0x41c   :  { %v1069_v63 = vpop.f32.mrf.mxu1  ;;  %v704_v1 = vpop.f32.mrf.mxu0 }
 0x41d   :  { %v614_v2 = vmax.f32 %v611_v62, 0.0  ;;  %v705_v3 = vadd.f32 %v913_v61, %v704_v1 }
 0x41e   :  { %v1104_v4 = vpop.f32.mrf.mxu0 }
 0x41f   :  { %v708_v5 = vmax.f32 %v705_v3, 0.0  ;;  %1173 = vmatmul.mubr.f32.vlgmr.msra.gmra.mxu0 %v614_v2 }
 0x421   :  { %1138 = vmatmul.mubr.f32.vlgmr.msra.gmra.mxu1 %v708_v5 }
 0x4df   :  { %v877_v0 = vpop.f32.mrf.mxu0 }
 0x4e1   :  { %v807_v6 = vpop.f32.mrf.mxu1  ;;  %v1174_v8 = vpop.f32.mrf.mxu0 }
 0x4e2   :  { %v878_v9 = vadd.f32 %v877_v0, %v807_v6 }
 0x4e3   :  { %v1139_v10 = vpop.f32.mrf.mxu1 }
 0x4e4   :  { %v888_v11 = vadd.f32 %v914_v7, %v878_v9 }
 0x4e6   :  { %889 = vst [vmem:[#allocation17] sm:$0xff] %v888_v11 }
 0x4e7   :  { %1386 = shalt.err (!%p1383_p7)
}
 0x4e8   :  { %899 = dma.vmem_to_hbm [thread:$0]  %s897_s26, 128, %s1695_s16, [#allocation4]  }
 0x4e9   :  { %1405 = dma.done.wait [#allocation4], 128  }
 0x4ea   :  { %1406 = vsyncadd [#allocation4], 4294967168 }
 0x4eb   :  { %903 = vsyncpa [#allocation3], 1 }
 0x4ec   :  { %904 = vsyncpa [#allocation6], 1 }
 0x4ed   :  { %905 = vsyncpa [#allocation9], 1 }
 0x4ee   :  { %906 = vsyncpa [#allocation12], 1 }
 0x4ef   :  { %907 = vsyncpa [#allocation15], 1 }
 0x4f0   :  { %908 = vsyncpa [#allocation4], 1 }

</bundles_post_ra>
